<compile_context>
chip_gen: v5e
topology: v5e:2x2
jax: 0.10.0
libtpu: 0.0.40
codegen_flags: <defaults>
</compile_context>

<pallas_src>
import functools
import math

import jax
import jax.numpy as jnp
from jax.experimental import pallas as pl
from jax.experimental.pallas import tpu as pltpu


def _round_up(n, m):
    return ((n + m - 1) // m) * m


def _cdiv(a, b):
    return -(-a // b)


def _rnnbase_kernel(x_ref, w_ref, b_ref, out_ref, *, hidden: int, ipad: int, c_pad: int):
    H = hidden
    H2, H8 = 2 * H, 8 * H

    x = x_ref[...]                                        # (TB, Ipad) bf16

    def fused_bidir_cell(xv, w, b):
        # One MXU matmul covers both directions; columns are gate-major packed:
        #   [ i_f i_b | f_f f_b | g_f g_b | o_f o_b ]   (each block H wide).
        # The g columns were pre-scaled by 2 at init, so a SINGLE full-lane
        # sigmoid over all 8H columns yields every activation:
        #   tanh(g) == 2 * sigmoid(2g) - 1.
        gates = jnp.dot(xv, w, preferred_element_type=jnp.float32) + b
        s = jax.nn.sigmoid(gates)                         # (TB, 8H): 2 full vregs/row-group
        i = s[:, 0:H2]                                    # sigmoid(i)
        gg = 2.0 * s[:, 2 * H2:3 * H2] - 1.0              # tanh(g) via pre-scaled columns
        o = s[:, 3 * H2:4 * H2]                           # sigmoid(o)
        # forget gate multiplies c0 == 0 (seq_len == 1) -> drops out exactly.
        return o * jnp.tanh(i * gg)                       # (TB, 2H) == [h_fwd | h_bwd]

    # layer 0 and layer 1 (seq_len == 1: both directions see the same step)
    h0 = fused_bidir_cell(x, w_ref[0:ipad, 0:H8], b_ref[0:1, 0:H8])
    h1 = fused_bidir_cell(h0.astype(jnp.bfloat16),
                          w_ref[ipad:ipad + H2, 0:H8], b_ref[1:2, 0:H8])

    # Folded FC head: Dropout (identity at inference) -> Linear(2H->2H,no bias)
    # -> BatchNorm1d(eval) -> Linear(2H->C), precomposed into one matmul.
    w_head = w_ref[ipad + H2:ipad + 2 * H2, 0:c_pad]      # (2H, Cpad)
    y = jnp.dot(h1.astype(jnp.bfloat16), w_head,
                preferred_element_type=jnp.float32) + b_ref[2:3, 0:c_pad]
    out_ref[...] = y.astype(out_ref.dtype)                # bf16, lane-dense (128) store


def _pick_tile(B, batch_tile):
    """Choose (TB, Bp).  Goals: tiles as large as possible, padding bounded to a
    few 8-row granules, and >=2 (even) grid steps for non-tiny batches so the
    parallel grid axis engages both v7x TensorCores."""
    Bp8 = _round_up(max(B, 1), 8)
    if Bp8 <= 64:                               # tiny batch: single grid step
        return Bp8, Bp8
    steps = max(2, _cdiv(Bp8, batch_tile))
    steps += steps % 2                          # even step count balances the 2 TCs
    TB = _round_up(_cdiv(Bp8, steps), 8)
    Bp = _round_up(Bp8, TB)
    return TB, Bp


def rnnbase_forward(x, params, *, batch_tile=2048):
    assert x.ndim == 2, "kernel assumes seq_len == 1 (PyTorch forward unsqueezes dim 1)"
    B, I = x.shape
    H = params["hidden"]
    Ipad = params["ipad"]
    Cpad = params["c_pad"]
    C = params["num_classes"]
    w_slab = params["w_slab"]                   # (Ipad + 4H, NW) bf16
    b_slab = params["b_slab"]                   # (3, NW)         f32

    TB, Bp = _pick_tile(B, batch_tile)
    xp = x.astype(jnp.bfloat16)
    if Bp != B or Ipad != I:
        xp = jnp.pad(xp, ((0, Bp - B), (0, Ipad - I)))

    # Working-set estimate -> explicit scoped-VMEM limit (v5e default is 16 MiB).
    temp_bytes = 12 * TB * max(8 * H, Cpad) * 4           # generous in-kernel f32 temps
    io_bytes = 2 * (TB * Ipad * 2 + TB * Cpad * 2)        # double-buffered streams
    w_bytes = 2 * (w_slab.size * 2 + b_slab.size * 4)     # resident slabs (2 buffers)
    vmem_limit = int(min(64 * 2**20, max(32 * 2**20, temp_bytes + io_bytes + w_bytes)))

    kernel = functools.partial(_rnnbase_kernel, hidden=H, ipad=Ipad, c_pad=Cpad)
    out = pl.pallas_call(
        kernel,
        out_shape=jax.ShapeDtypeStruct((Bp, Cpad), jnp.bfloat16),
        grid=(Bp // TB,),
        in_specs=[
            pl.BlockSpec((TB, Ipad), lambda i: (i, 0)),        # activation stream
            pl.BlockSpec(w_slab.shape, lambda i: (0, 0)),      # weights stay resident
            pl.BlockSpec(b_slab.shape, lambda i: (0, 0)),      # biases stay resident
        ],
        out_specs=pl.BlockSpec((TB, Cpad), lambda i: (i, 0)),  # lane-dense bf16 store
        compiler_params=pltpu.CompilerParams(
            dimension_semantics=("parallel",),
            vmem_limit_bytes=vmem_limit),
    )(xp, w_slab, b_slab)
    return out[:B, :C].astype(jnp.float32)


def init_params(key, input_size, hidden, num_classes):
    """PyTorch-style uniform(-1/sqrt(H), 1/sqrt(H)) init, packed into two slabs."""
    H = hidden
    H2, H8 = 2 * H, 8 * H
    Ipad = _round_up(input_size, 8)
    Cpad = _round_up(max(num_classes, 128), 128)
    NW = max(H8, Cpad)

    bound = 1.0 / math.sqrt(H)
    keys = iter(jax.random.split(key, 24))

    def u(shape, b=bound):
        return jax.random.uniform(next(keys), shape, jnp.float32, -b, b)

    def lstm_dir(in_size):
        # PyTorch: weight_ih (4H, in), gate order [i, f, g, o]; h0 = 0 so weight_hh
        # never contributes — only the summed biases do.
        w_ih = u((4 * H, in_size))
        bias = u((4 * H,)) + u((4 * H,))
        return w_ih.T, bias                                # (in, 4H), (4H,)

    w0f, b0f = lstm_dir(input_size)
    w0b, b0b = lstm_dir(input_size)
    w1f, b1f = lstm_dir(H2)
    w1b, b1b = lstm_dir(H2)

    # g pre-scaled by 2 so the kernel can use tanh(x) = 2*sigmoid(2x) - 1
    # (power-of-two scale => exact in bf16).
    G_SCALE = (1.0, 1.0, 2.0, 1.0)                         # [i, f, g, o]

    def pack_w(wf, wb):      # gate-major columns: [i_f i_b f_f f_b g_f g_b o_f o_b]
        parts = []
        for g in range(4):
            parts += [wf[:, g * H:(g + 1) * H] * G_SCALE[g],
                      wb[:, g * H:(g + 1) * H] * G_SCALE[g]]
        return jnp.concatenate(parts, axis=1)              # (in, 8H)

    def pack_b(bf, bb):
        parts = []
        for g in range(4):
            parts += [bf[g * H:(g + 1) * H] * G_SCALE[g],
                      bb[g * H:(g + 1) * H] * G_SCALE[g]]
        return jnp.concatenate(parts)                      # (8H,)

    w0, b0 = pack_w(w0f, w0b), pack_b(b0f, b0b)
    w1, b1 = pack_w(w1f, w1b), pack_b(b1f, b1b)

    # fc head: Dropout(0.2) [inference identity] -> Linear(2H->2H, no bias)
    # -> BatchNorm1d(2H) eval -> Linear(2H->C, bias).  All affine -> fold offline.
    bfc = 1.0 / math.sqrt(H2)
    fc1_w = u((H2, H2), bfc)
    gamma = u((H2,), 1.0) * 0.5 + 1.0
    beta = u((H2,), 0.5)
    running_mean = u((H2,), 0.5)
    running_var = u((H2,), 0.25) + 1.0
    eps = 1e-5
    bn_scale = gamma / jnp.sqrt(running_var + eps)
    bn_shift = beta - running_mean * bn_scale
    fc2_w = u((num_classes, H2), bfc)
    fc2_b = u((num_classes,), bfc)

    #   y = ((h @ fc1^T) * bn_scale + bn_shift) @ fc2^T + fc2_b = h @ W_head + b_head
    w_head = (fc1_w.T * bn_scale[None, :]) @ fc2_w.T       # (2H, C), composed in f32
    b_head = bn_shift @ fc2_w.T + fc2_b                    # (C,)

    # One bf16 weight slab: rows [w0 | w1 | W_head].
    w_slab = jnp.zeros((Ipad + 2 * H2, NW), jnp.float32)
    w_slab = w_slab.at[0:input_size, 0:H8].set(w0)
    w_slab = w_slab.at[Ipad:Ipad + H2, 0:H8].set(w1)
    w_slab = w_slab.at[Ipad + H2:Ipad + 2 * H2, 0:num_classes].set(w_head)
    w_slab = w_slab.astype(jnp.bfloat16)

    # One f32 bias slab: rows [b0 | b1 | b_head].
    b_slab = jnp.zeros((3, NW), jnp.float32)
    b_slab = b_slab.at[0, 0:H8].set(b0)
    b_slab = b_slab.at[1, 0:H8].set(b1)
    b_slab = b_slab.at[2, 0:num_classes].set(b_head)

    return dict(hidden=H, ipad=Ipad, c_pad=Cpad, num_classes=num_classes,
                input_size=input_size, w_slab=w_slab, b_slab=b_slab)


def _reference(x, params):
    """Pure-JAX reference on the same packed (bf16-quantized) parameters, f32 math."""
    H = params["hidden"]; Ipad = params["ipad"]; Cpad = params["c_pad"]; C = params["num_classes"]
    H2, H8 = 2 * H, 8 * H
    w = params["w_slab"].astype(jnp.float32)
    b = params["b_slab"]
    xp = jnp.pad(x, ((0, 0), (0, Ipad - x.shape[1])))
    xp = xp.astype(jnp.bfloat16).astype(jnp.float32)

    def cell(xv, wm, bv):
        g = xv @ wm + bv
        s = jax.nn.sigmoid(g)
        i = s[:, 0:H2]
        gg = 2.0 * s[:, 2 * H2:3 * H2] - 1.0
        o = s[:, 3 * H2:4 * H2]
        return o * jnp.tanh(i * gg)

    h0 = cell(xp, w[0:Ipad, 0:H8], b[0, 0:H8])
    h1 = cell(h0.astype(jnp.bfloat16).astype(jnp.float32),
              w[Ipad:Ipad + H2, 0:H8], b[1, 0:H8])
    y = h1.astype(jnp.bfloat16).astype(jnp.float32) @ w[Ipad + H2:Ipad + 2 * H2, 0:Cpad] \
        + b[2, 0:Cpad]
    return y[:, :C]


if __name__ == "__main__":
    batch, input_size, hidden, num_classes = 8, 32, 32, 16
    key = jax.random.PRNGKey(0)
    kx, kp = jax.random.split(key)
    x = jax.random.normal(kx, (batch, input_size), jnp.float32)
    params = init_params(kp, input_size, hidden, num_classes)

    out = jax.block_until_ready(rnnbase_forward(x, params))
    assert out.shape == (batch, num_classes), out.shape
    assert bool(jnp.all(jnp.isfinite(out)))

    ref = jax.block_until_ready(_reference(x, params))
    assert bool(jnp.allclose(out, ref, rtol=2e-2, atol=2e-2)), \
        float(jnp.max(jnp.abs(out - ref)))
    print("KERNEL_OK")
</pallas_src>

<mosaic_0001>
module attributes {stable_mosaic.version = 11 : i64} {
  func.func @_rnnbase_kernel(%arg0: i32, %arg1: memref<8x32xbf16, #tpu.memory_space<vmem>>, %arg2: memref<160x256xbf16, #tpu.memory_space<vmem>>, %arg3: memref<3x256xf32, #tpu.memory_space<vmem>>, %arg4: memref<8x128xbf16, #tpu.memory_space<vmem>>) attributes {dimension_semantics = [#tpu.dimension_semantics<parallel>], iteration_bounds = array<i64: 1>, scalar_prefetch = 0 : i64, scratch_operands = 0 : i64, tpu.core_type = #tpu.core_type<tc>, window_params = [{transform_indices = @transform_0, window_bounds = array<i64: 8, 32>}, {pipeline_mode = #tpu.pipeline_mode<synchronous>, transform_indices = @transform_1, window_bounds = array<i64: 160, 256>}, {pipeline_mode = #tpu.pipeline_mode<synchronous>, transform_indices = @transform_2, window_bounds = array<i64: 3, 256>}, {transform_indices = @transform_3, window_bounds = array<i64: 8, 128>}]} {
    %c0 = arith.constant 0 : index
    %c0_0 = arith.constant 0 : index
    %0 = vector.load %arg1[%c0, %c0_0] : memref<8x32xbf16, #tpu.memory_space<vmem>>, vector<8x32xbf16>
    %c0_1 = arith.constant 0 : index
    %c0_2 = arith.constant 0 : index
    %1 = vector.load %arg2[%c0_1, %c0_2] : memref<160x256xbf16, #tpu.memory_space<vmem>>, vector<32x256xbf16>
    %c0_3 = arith.constant 0 : index
    %c0_4 = arith.constant 0 : index
    %2 = vector.load %arg3[%c0_3, %c0_4] : memref<3x256xf32, #tpu.memory_space<vmem>>, vector<1x256xf32>
    %cst = arith.constant dense<0.000000e+00> : vector<8x256xf32>
    %3 = tpu.matmul %0, %1, %cst {dimension_numbers = #tpu.dot_dimension_numbers<[1], [0], [0], [1], [0, 0, 1, 1], [], []>} : vector<8x32xbf16>, vector<32x256xbf16>, vector<8x256xf32> -> vector<8x256xf32>
    %4 = vector.broadcast %2 : vector<1x256xf32> to vector<8x256xf32>
    %5 = arith.addf %3, %4 : vector<8x256xf32>
    %6 = arith.negf %5 : vector<8x256xf32>
    %7 = math.exp %6 : vector<8x256xf32>
    %cst_5 = arith.constant 1.000000e+00 : f32
    %8 = vector.broadcast %cst_5 : f32 to vector<8x256xf32>
    %9 = arith.addf %8, %7 : vector<8x256xf32>
    %10 = arith.divf %8, %9 : vector<8x256xf32>
    %11 = vector.extract_strided_slice %10 {offsets = [0, 0], sizes = [8, 64], strides = [1, 1]} : vector<8x256xf32> to vector<8x64xf32>
    %12 = vector.extract_strided_slice %10 {offsets = [0, 128], sizes = [8, 64], strides = [1, 1]} : vector<8x256xf32> to vector<8x64xf32>
    %cst_6 = arith.constant 2.000000e+00 : f32
    %13 = vector.broadcast %cst_6 : f32 to vector<8x64xf32>
    %14 = arith.mulf %13, %12 : vector<8x64xf32>
    %cst_7 = arith.constant 1.000000e+00 : f32
    %15 = vector.broadcast %cst_7 : f32 to vector<8x64xf32>
    %16 = arith.subf %14, %15 : vector<8x64xf32>
    %17 = vector.extract_strided_slice %10 {offsets = [0, 192], sizes = [8, 64], strides = [1, 1]} : vector<8x256xf32> to vector<8x64xf32>
    %18 = arith.mulf %11, %16 : vector<8x64xf32>
    %19 = math.tanh %18 : vector<8x64xf32>
    %20 = arith.mulf %17, %19 : vector<8x64xf32>
    %21 = arith.truncf %20 : vector<8x64xf32> to vector<8x64xbf16>
    %c32 = arith.constant 32 : index
    %c0_8 = arith.constant 0 : index
    %22 = vector.load %arg2[%c32, %c0_8] : memref<160x256xbf16, #tpu.memory_space<vmem>>, vector<64x256xbf16>
    %c1 = arith.constant 1 : index
    %c0_9 = arith.constant 0 : index
    %23 = vector.load %arg3[%c1, %c0_9] : memref<3x256xf32, #tpu.memory_space<vmem>>, vector<1x256xf32>
    %cst_10 = arith.constant dense<0.000000e+00> : vector<8x256xf32>
    %24 = tpu.matmul %21, %22, %cst_10 {dimension_numbers = #tpu.dot_dimension_numbers<[1], [0], [0], [1], [0, 0, 1, 1], [], []>} : vector<8x64xbf16>, vector<64x256xbf16>, vector<8x256xf32> -> vector<8x256xf32>
    %25 = vector.broadcast %23 : vector<1x256xf32> to vector<8x256xf32>
    %26 = arith.addf %24, %25 : vector<8x256xf32>
    %27 = arith.negf %26 : vector<8x256xf32>
    %28 = math.exp %27 : vector<8x256xf32>
    %cst_11 = arith.constant 1.000000e+00 : f32
    %29 = vector.broadcast %cst_11 : f32 to vector<8x256xf32>
    %30 = arith.addf %29, %28 : vector<8x256xf32>
    %31 = arith.divf %29, %30 : vector<8x256xf32>
    %32 = vector.extract_strided_slice %31 {offsets = [0, 0], sizes = [8, 64], strides = [1, 1]} : vector<8x256xf32> to vector<8x64xf32>
    %33 = vector.extract_strided_slice %31 {offsets = [0, 128], sizes = [8, 64], strides = [1, 1]} : vector<8x256xf32> to vector<8x64xf32>
    %cst_12 = arith.constant 2.000000e+00 : f32
    %34 = vector.broadcast %cst_12 : f32 to vector<8x64xf32>
    %35 = arith.mulf %34, %33 : vector<8x64xf32>
    %cst_13 = arith.constant 1.000000e+00 : f32
    %36 = vector.broadcast %cst_13 : f32 to vector<8x64xf32>
    %37 = arith.subf %35, %36 : vector<8x64xf32>
    %38 = vector.extract_strided_slice %31 {offsets = [0, 192], sizes = [8, 64], strides = [1, 1]} : vector<8x256xf32> to vector<8x64xf32>
    %39 = arith.mulf %32, %37 : vector<8x64xf32>
    %40 = math.tanh %39 : vector<8x64xf32>
    %41 = arith.mulf %38, %40 : vector<8x64xf32>
    %c96 = arith.constant 96 : index
    %c0_14 = arith.constant 0 : index
    %42 = vector.load %arg2[%c96, %c0_14] : memref<160x256xbf16, #tpu.memory_space<vmem>>, vector<64x128xbf16>
    %43 = arith.truncf %41 : vector<8x64xf32> to vector<8x64xbf16>
    %cst_15 = arith.constant dense<0.000000e+00> : vector<8x128xf32>
    %44 = tpu.matmul %43, %42, %cst_15 {dimension_numbers = #tpu.dot_dimension_numbers<[1], [0], [0], [1], [0, 0, 1, 1], [], []>} : vector<8x64xbf16>, vector<64x128xbf16>, vector<8x128xf32> -> vector<8x128xf32>
    %c2 = arith.constant 2 : index
    %c0_16 = arith.constant 0 : index
    %45 = vector.load %arg3[%c2, %c0_16] : memref<3x256xf32, #tpu.memory_space<vmem>>, vector<1x128xf32>
    %46 = vector.broadcast %45 : vector<1x128xf32> to vector<8x128xf32>
    %47 = arith.addf %44, %46 : vector<8x128xf32>
    %48 = arith.truncf %47 : vector<8x128xf32> to vector<8x128xbf16>
    %c0_17 = arith.constant 0 : index
    %c0_18 = arith.constant 0 : index
    %49 = vector.load %arg4[%c0_17, %c0_18] : memref<8x128xbf16, #tpu.memory_space<vmem>>, vector<8x128xbf16>
    tpu.vector_store %arg4[%c0_17, %c0_18], %48 {strides = array<i32>} : memref<8x128xbf16, #tpu.memory_space<vmem>>, vector<8x128xbf16>,
    return
  }
  func.func @transform_0(%arg0: i32) -> (i32, i32) {
    %c0_i32 = arith.constant 0 : i32
    %c0_i32_0 = arith.constant 0 : i32
    return %arg0, %c0_i32 : i32, i32
  }
  func.func @transform_1(%arg0: i32) -> (i32, i32) {
    %c0_i32 = arith.constant 0 : i32
    %c0_i32_0 = arith.constant 0 : i32
    %c0_i32_1 = arith.constant 0 : i32
    return %c0_i32, %c0_i32_0 : i32, i32
  }
  func.func @transform_2(%arg0: i32) -> (i32, i32) {
    %c0_i32 = arith.constant 0 : i32
    %c0_i32_0 = arith.constant 0 : i32
    %c0_i32_1 = arith.constant 0 : i32
    return %c0_i32, %c0_i32_0 : i32, i32
  }
  func.func @transform_3(%arg0: i32) -> (i32, i32) {
    %c0_i32 = arith.constant 0 : i32
    %c0_i32_0 = arith.constant 0 : i32
    return %arg0, %c0_i32 : i32, i32
  }
}

</mosaic_0001>

<bundles_post_ra>
// kernel: tpu_custom_call.1
= control target key start
LH: loop header
LB: loop body
LE: loop exit
PB: predicated region body
PF: predicated region fallthrough
CT: control target
= control target key end

     0   :  { %8 = vsyncpa [#allocation3], 0  ;;  %s644_s0 = inlined_call_operand.hbm [shape: bf16[8,32], index: 0, kind: input, shape index: {}]   ;;  %s645_s1 = inlined_call_operand.hbm [shape: bf16[160,256], index: 1, kind: input, shape index: {}]   ;;  %s646_s2 = inlined_call_operand.hbm [shape: f32[3,256], index: 2, kind: input, shape index: {}]   ;;  %s647_s3 = inlined_call_operand.hbm [shape: bf16[8,128], index: 3, kind: output, shape index: {}]  }
   0x1   :  { %9 = vsyncpa [#allocation6], 0  ;;  %s26_s14 = sshll.u32 %s645_s1, 4  ;;  %s27_s14 = int_to_ptr.hbm [resolvable:$true] %s26_s14 }
   0x2   :  { %10 = vsyncpa [#allocation4], 0  ;;  %s598_s15 = smov [#allocation5]   ;;  %s16_s19 = sshll.u32 %s644_s0, 4  ;;  %s17_s19 = int_to_ptr.hbm [resolvable:$true] %s16_s19 }
   0x3   :  { %s28_s16 = sshll.u32 %s598_s15, 4  ;;  %s599_s20 = smov 128   ;;  %s29_s16 = int_to_ptr.vmem [resolvable:$true] %s28_s16 }
   0x4   :  { %s600_s21 = smov 8   ;;  %s601_s22 = smov [#allocation2]  }
   0x5   :  { %34 = dma.hbm_to_vmem [thread:$0]  %s27_s14, 2560, %s29_s16, [#allocation6], %s599_s20, %s599_s20, %s600_s21  }
   0x6   :  { %s18_s23 = sshll.u32 %s601_s22, 4  ;;  %s40_s26 = sshll.u32 %s646_s2, 4  ;;  %s19_s23 = int_to_ptr.vmem [resolvable:$true] %s18_s23  ;;  %s41_s26 = int_to_ptr.hbm [resolvable:$true] %s40_s26 }
   0x7   :  { %21 = dma.hbm_to_vmem [thread:$0]  %s17_s19, 64, %s19_s23, [#allocation3]  }
   0x8   :  { %s602_s1 = smov [#allocation7]  }
   0x9   :  { %s42_s27 = sshll.u32 %s602_s1, 4  ;;  %s43_s27 = int_to_ptr.vmem [resolvable:$true] %s42_s27 }
   0xa   :  { %45 = dma.hbm_to_vmem [thread:$0]  %s41_s26, 128, %s43_s27, [#allocation6]  }
   0xb   :  { %592 = dma.done.wait [#allocation3], 64  }
   0xc   :  { %593 = vsyncadd [#allocation3], 4294967232 }
   0xd   :  { %594 = dma.done.wait [#allocation6], 2688  }
   0xe   :  { %595 = vsyncadd [#allocation6], 4294964608  ;;  %v387_v0 = vld [vmem:[#allocation5 + $0x10] sm:$0xf]  ;;  %v455_v1 = vld [vmem:[#allocation5 + $0x14] sm:$0xf0] }
   0xf   :  { %v454_v2 = vld [vmem:[#allocation5 + $0x14] sm:$0xf]  ;;  %v388_v3 = vor.u32 %v455_v1, %v387_v0  ;;  %v389_v4 = vld [vmem:[#allocation5 + $0x18] sm:$0xf0]  ;;  %v379_v5 = vld [vmem:[#allocation5] sm:$0xf] }
  0x10   :  { %v453_v6 = vld [vmem:[#allocation5 + $0x4] sm:$0xf0]  ;;  %v392_v7 = vor.u32 %v454_v2, %v389_v4  ;;  %v452_v8 = vld [vmem:[#allocation5 + $0x4] sm:$0xf]  ;;  %v381_v9 = vld [vmem:[#allocation5 + $0x8] sm:$0xf0] }
  0x11   :  { %100 = vmatpush.bf16.msra.mxu0 %v388_v3  ;;  %v380_v10 = vor.u32 %v453_v6, %v379_v5  ;;  %v384_v11 = vor.u32 %v452_v8, %v381_v9  ;;  %v59_v12 = vld [vmem:[#allocation2] sm:$0xf]  ;;  %vm90_vm0 = vcmask 261120   ;;  %v64_v13 = vld [vmem:[#allocation7] ss:$4 sm:$0x3] }
  0x12   :  { %113 = vmatpush.bf16.msra.mxu1 %v392_v7  ;;  %v66_v14 = vperm.slane %v64_v13, 0  ;;  %v67_v15 = vperm.slane %v64_v13, 1  ;;  %s603_s0 = smov 64   ;;  %v424_v52 = vld [vmem:[#allocation5 + $0x50] sm:$0xf]  ;;  %vm226_vm9 = vcmask 523264  }
  0x13   :  { %v463_v53 = vld [vmem:[#allocation5 + $0x54] sm:$0xf0]  ;;  %v462_v54 = vld [vmem:[#allocation5 + $0x54] sm:$0xf]  ;;  %v426_v56 = vld [vmem:[#allocation5 + $0x58] sm:$0xf0] }
  0x14   :  { %v425_v55 = vor.u32 %v463_v53, %v424_v52  ;;  %v416_v57 = vld [vmem:[#allocation5 + $0x40] sm:$0xf]  ;;  %v461_v58 = vld [vmem:[#allocation5 + $0x44] sm:$0xf0]  ;;  %v429_v59 = vor.u32 %v462_v54, %v426_v56  ;;  %v460_v60 = vld [vmem:[#allocation5 + $0x44] sm:$0xf] }
  0x15   :  { %101 = vmatpush.bf16.msra.mxu0 %v380_v10  ;;  %v418_v61 = vld [vmem:[#allocation5 + $0x48] sm:$0xf0]  ;;  %v417_v62 = vor.u32 %v461_v58, %v416_v57  ;;  %v408_v0 = vld [vmem:[#allocation5 + $0x30] sm:$0xf]  ;;  %v459_v1 = vld [vmem:[#allocation5 + $0x34] sm:$0xf0] }
  0x16   :  { %114 = vmatpush.bf16.msra.mxu1 %v384_v11  ;;  %234 = vmatpush.bf16.msra.mxu2 %v425_v55  ;;  %v421_v63 = vor.u32 %v460_v60, %v418_v61  ;;  %v458_v2 = vld [vmem:[#allocation5 + $0x34] sm:$0xf]  ;;  %v410_v3 = vld [vmem:[#allocation5 + $0x38] sm:$0xf0]  ;;  %v409_v4 = vor.u32 %v459_v1, %v408_v0  ;;  %v400_v6 = vld [vmem:[#allocation5 + $0x20] sm:$0xf] }
  0x17   :  { %247 = vmatpush.bf16.msra.mxu3 %v429_v59  ;;  %v413_v5 = vor.u32 %v458_v2, %v410_v3  ;;  %v457_v7 = vld [vmem:[#allocation5 + $0x24] sm:$0xf0]  ;;  %v456_v8 = vld [vmem:[#allocation5 + $0x24] sm:$0xf]  ;;  %v402_v9 = vld [vmem:[#allocation5 + $0x28] sm:$0xf0] }
  0x18   :  { %393 = vmatmul.msk.bf16.vlgmr.msra.gmra.mxu0 %vm90_vm0, %v59_v12  ;;  %v401_v10 = vor.u32 %v457_v7, %v400_v6  ;;  %v405_v11 = vor.u32 %v456_v8, %v402_v9  ;;  %v449_v55 = vld [vmem:[#allocation5 + $0x90] sm:$0xf]  ;;  %v467_v56 = vld [vmem:[#allocation5 + $0x94] sm:$0xf0]  ;;  %v445_v57 = vld [vmem:[#allocation5 + $0x80] sm:$0xf] }
  0x19   :  { %394 = vmatmul.msk.bf16.vlgmr.msra.gmra.mxu1 %vm90_vm0, %v59_v12  ;;  %v450_v58 = vor.u32 %v467_v56, %v449_v55  ;;  %v466_v59 = vld [vmem:[#allocation5 + $0x84] sm:$0xf0]  ;;  %v441_v61 = vld [vmem:[#allocation5 + $0x70] sm:$0xf]  ;;  %v437_v0 = vld [vmem:[#allocation5 + $0x60] sm:$0xf] }
  0x1a   :  { %235 = vmatpush.bf16.msra.mxu2 %v417_v62  ;;  %v446_v60 = vor.u32 %v466_v59, %v445_v57  ;;  %v465_v62 = vld [vmem:[#allocation5 + $0x74] sm:$0xf0]  ;;  %v464_v1 = vld [vmem:[#allocation5 + $0x64] sm:$0xf0]  ;;  %v475_v7 = vld [vmem:[#allocation7 + $0x2] ss:$0 sm:$0xff] }
  0x1b   :  { %248 = vmatpush.bf16.msra.mxu3 %v421_v63  ;;  %348 = vmatpush.bf16.msrb.mxu0 %v450_v58  ;;  %v442_v63 = vor.u32 %v465_v62, %v441_v61  ;;  %v438_v2 = vor.u32 %v464_v1, %v437_v0  ;;  %s604_s2 = smov [#allocation8]   ;;  %s366_s4 = sshll.u32 %s647_s3, 4  ;;  %s367_s4 = int_to_ptr.hbm [resolvable:$true] %s366_s4 }
  0x1c   :  { %s364_s28 = sshll.u32 %s604_s2, 4  ;;  %s365_s28 = int_to_ptr.vmem [resolvable:$true] %s364_s28 }
  0x1e   :  { %236 = vmatpush.bf16.msra.mxu2 %v409_v4 }
  0x1f   :  { %249 = vmatpush.bf16.msra.mxu3 %v413_v5  ;;  %349 = vmatpush.bf16.msrb.mxu0 %v446_v60 }
  0x22   :  { %237 = vmatpush.bf16.msra.mxu2 %v401_v10 }
  0x23   :  { %250 = vmatpush.bf16.msra.mxu3 %v405_v11  ;;  %350 = vmatpush.bf16.msrb.mxu0 %v442_v63 }
  0x27   :  { %351 = vmatpush.bf16.msrb.mxu0 %v438_v2 }
  0x95   :  { %v103_v16 = vpop.f32.mrf.mxu0 }
  0x96   :  { %v104_v17 = vadd.f32 %v103_v16, %v66_v14  ;;  %v116_v18 = vpop.f32.mrf.mxu1  ;;  %v177_v16 = vld [vmem:[#allocation7 + $0x1] ss:$4 sm:$0x3] }
  0x97   :  { %v117_v19 = vadd.f32 %v116_v18, %v67_v15  ;;  %v180_v18 = vperm.slane %v177_v16, 1 }
  0x98   :  { %v395_v20 = vmul.f32 -1.442695, %v104_v17  ;;  %v179_v17 = vperm.slane %v177_v16, 0 }
  0x99   :  { %v396_v21 = vmul.f32 -1.442695, %v117_v19 }
  0x9a   :  { %476 = vpow2.f32 %v395_v20 }
  0x9b   :  { %478 = vpow2.f32 %v396_v21 }
  0x9d   :  { %v105_v22 = vpop.f32.mrf.mxu0 }
  0x9e   :  { %v118_v23 = vpop.f32.mrf.mxu1 }
  0xa0   :  { %v477_v24 = vpop.eup %476 }
  0xa1   :  { %v479_v25 = vpop.eup %478  ;;  %v126_v26 = vadd.f32 1.0, %v477_v24 }
  0xa2   :  { %v127_v27 = vadd.f32 1.0, %v479_v25 }
  0xa3   :  { %480 = vrcp.f32 %v126_v26  ;;  %v139_v40 = vand.u32 2147483648, %v126_v26  ;;  %vm133_vm5 = vweird.f32 %v126_v26  ;;  %v137_v42 = vand.u32 2147483647, %v126_v26 }
  0xa4   :  { %482 = vrcp.f32 %v127_v27  ;;  %v154_v35 = vand.u32 2147483648, %v127_v27  ;;  %v152_v37 = vand.u32 2147483647, %v127_v27  ;;  %vm148_vm2 = vweird.f32 %v127_v27 }
  0xa5   :  { %v140_v47 = vor.u32 1.1754944e-38, %v139_v40  ;;  %vm138_vm8 = vcmp.eq.f32.partialorder %v137_v42, 8.507059e+37 }
  0xa6   :  { %v155_v41 = vor.u32 1.1754944e-38, %v154_v35  ;;  %vm153_vm6 = vcmp.eq.f32.partialorder %v152_v37, 8.507059e+37 }
  0xa9   :  { %v481_v28 = vpop.eup %480 }
  0xaa   :  { %v483_v29 = vpop.eup %482  ;;  %v129_v30 = vmul.f32 %v481_v28, %v126_v26  ;;  %vm134_vm3 = vweird.f32 %v481_v28 }
  0xab   :  { %v144_v31 = vmul.f32 %v483_v29, %v127_v27  ;;  %vm149_vm1 = vweird.f32 %v483_v29  ;;  %vm135_vm7 = vmor %vm133_vm5, %vm134_vm3 }
  0xac   :  { %v130_v32 = vsub.f32 1.0, %v129_v30  ;;  %vm150_vm4 = vmor %vm148_vm2, %vm149_vm1 }
  0xad   :  { %v145_v33 = vsub.f32 1.0, %v144_v31 }
  0xae   :  { %v131_v34 = vmul.f32 %v481_v28, %v130_v32 }
  0xaf   :  { %v146_v36 = vmul.f32 %v483_v29, %v145_v33 }
  0xb0   :  { %v132_v38 = vadd.f32 %v481_v28, %v131_v34 }
  0xb1   :  { %v147_v39 = vadd.f32 %v483_v29, %v146_v36 }
  0xb2   :  { %v136_v45 = vsel %vm135_vm7, %v481_v28, %v132_v38 }
  0xb3   :  { %v151_v43 = vsel %vm150_vm4, %v483_v29, %v147_v39  ;;  %v141_v49 = vsel %vm138_vm8, %v140_v47, %v136_v45 }
  0xb4   :  { %v156_v44 = vsel %vm153_vm6, %v155_v41, %v151_v43 }
  0xb5   :  { %v158_v46 = vmul.f32 2.0, %v156_v44 }
  0xb7   :  { %v397_v48 = vadd.f32 -1.0, %v158_v46 }
  0xb9   :  { %v160_v50 = vmul.f32 %v397_v48, %v141_v49 }
  0xbb   :  { %484 = vtanh.f32 %v160_v50 }
  0xc1   :  { %v485_v51 = vpop.eup %484 }
  0xc2   :  { %163 = vrot.lane.b32.xlu0 %v485_v51, %s603_s0 }
 0x134   :  { %v164_v12 = vpop.permute.xlu0 %163 }
 0x135   :  { %v166_v13 = vmul.f32 %v164_v12, %v156_v44 }
 0x137   :  { %v167_v14 = vpack.c.bf16 %v166_v13, %v166_v13 }
 0x139   :  { %184 = vrot.lane.b32.xlu0 %v167_v14, %s603_s0 }
 0x1ab   :  { %v185_v15 = vpop.permute.xlu0 %184 }
 0x1ac   :  { %430 = vmatmul.msk.bf16.vlgmr.msra.gmra.mxu2 %vm226_vm9, %v185_v15  ;;  %431 = vmatmul.msk.bf16.vlgmr.msra.gmra.mxu3 %vm226_vm9, %v185_v15 }
 0x22f   :  { %v239_v19 = vpop.f32.mrf.mxu2  ;;  %v252_v20 = vpop.f32.mrf.mxu3 }
 0x230   :  { %v240_v21 = vadd.f32 %v239_v19, %v179_v17  ;;  %v253_v22 = vadd.f32 %v252_v20, %v180_v18 }
 0x232   :  { %v432_v23 = vmul.f32 -1.442695, %v240_v21  ;;  %v433_v24 = vmul.f32 -1.442695, %v253_v22 }
 0x234   :  { %486 = vpow2.f32 %v432_v23 }
 0x235   :  { %488 = vpow2.f32 %v433_v24 }
 0x237   :  { %v241_v25 = vpop.f32.mrf.mxu2  ;;  %v254_v26 = vpop.f32.mrf.mxu3 }
 0x23a   :  { %v487_v27 = vpop.eup %486 }
 0x23b   :  { %v489_v28 = vpop.eup %488  ;;  %v262_v29 = vadd.f32 1.0, %v487_v27 }
 0x23c   :  { %v263_v30 = vadd.f32 1.0, %v489_v28 }
 0x23d   :  { %490 = vrcp.f32 %v262_v29  ;;  %v275_v43 = vand.u32 2147483648, %v262_v29  ;;  %vm269_vm14 = vweird.f32 %v262_v29  ;;  %v273_v45 = vand.u32 2147483647, %v262_v29 }
 0x23e   :  { %492 = vrcp.f32 %v263_v30  ;;  %v290_v38 = vand.u32 2147483648, %v263_v30  ;;  %v288_v40 = vand.u32 2147483647, %v263_v30  ;;  %vm284_vm11 = vweird.f32 %v263_v30 }
 0x23f   :  { %v276_v50 = vor.u32 1.1754944e-38, %v275_v43  ;;  %vm274_vm1 = vcmp.eq.f32.partialorder %v273_v45, 8.507059e+37 }
 0x240   :  { %v291_v44 = vor.u32 1.1754944e-38, %v290_v38  ;;  %vm289_vm15 = vcmp.eq.f32.partialorder %v288_v40, 8.507059e+37 }
 0x243   :  { %v491_v31 = vpop.eup %490 }
 0x244   :  { %v493_v32 = vpop.eup %492  ;;  %v265_v33 = vmul.f32 %v491_v31, %v262_v29  ;;  %vm270_vm12 = vweird.f32 %v491_v31 }
 0x245   :  { %v280_v34 = vmul.f32 %v493_v32, %v263_v30  ;;  %vm285_vm10 = vweird.f32 %v493_v32  ;;  %vm271_vm0 = vmor %vm269_vm14, %vm270_vm12 }
 0x246   :  { %v266_v35 = vsub.f32 1.0, %v265_v33  ;;  %vm286_vm13 = vmor %vm284_vm11, %vm285_vm10 }
 0x247   :  { %v281_v36 = vsub.f32 1.0, %v280_v34 }
 0x248   :  { %v267_v37 = vmul.f32 %v491_v31, %v266_v35 }
 0x249   :  { %v282_v39 = vmul.f32 %v493_v32, %v281_v36 }
 0x24a   :  { %v268_v41 = vadd.f32 %v491_v31, %v267_v37 }
 0x24b   :  { %v283_v42 = vadd.f32 %v493_v32, %v282_v39 }
 0x24c   :  { %v272_v48 = vsel %vm271_vm0, %v491_v31, %v268_v41 }
 0x24d   :  { %v287_v46 = vsel %vm286_vm13, %v493_v32, %v283_v42  ;;  %v277_v52 = vsel %vm274_vm1, %v276_v50, %v272_v48 }
 0x24e   :  { %v292_v47 = vsel %vm289_vm15, %v291_v44, %v287_v46 }
 0x24f   :  { %v294_v49 = vmul.f32 2.0, %v292_v47 }
 0x251   :  { %v434_v51 = vadd.f32 -1.0, %v294_v49 }
 0x253   :  { %v296_v53 = vmul.f32 %v434_v51, %v277_v52 }
 0x255   :  { %494 = vtanh.f32 %v296_v53 }
 0x25b   :  { %v495_v54 = vpop.eup %494 }
 0x25c   :  { %299 = vrot.lane.b32.xlu1 %v495_v54, %s603_s0 }
 0x2ce   :  { %v300_v3 = vpop.permute.xlu1 %299 }
 0x2cf   :  { %v302_v4 = vmul.f32 %v300_v3, %v292_v47 }
 0x2d1   :  { %v311_v5 = vpack.c.bf16 %v302_v4, %v302_v4 }
 0x2d3   :  { %315 = vrot.lane.b32.xlu1 %v311_v5, %s603_s0 }
 0x345   :  { %v316_v6 = vpop.permute.xlu1 %315 }
 0x346   :  { %451 = vmatmul.msk.bf16.vlgmr.msrb.gmra.mxu0 %vm226_vm9, %v316_v6 }
 0x3c3   :  { %v353_v8 = vpop.f32.mrf.mxu0 }
 0x3c4   :  { %v354_v9 = vadd.f32 %v475_v7, %v353_v8 }
 0x3c6   :  { %v357_v10 = vpack.c.bf16 %v354_v9, %v354_v9 }
 0x3c8   :  { %358 = vst [vmem:[#allocation8] sm:$0xf] %v357_v10 }
 0x3c9   :  { %369 = dma.vmem_to_hbm [thread:$0]  %s365_s28, 64, %s367_s4, [#allocation4]  }
 0x3cb   :  { %v355_v11 = vpop.f32.mrf.mxu0 }
 0x3cc   :  { %596 = dma.done.wait [#allocation4], 64  }
 0x3cd   :  { %597 = vsyncadd [#allocation4], 4294967232 }
 0x3ce   :  { %374 = vsyncpa [#allocation3], 1 }
 0x3cf   :  { %375 = vsyncpa [#allocation6], 1 }
 0x3d0   :  { %376 = vsyncpa [#allocation4], 1 }

</bundles_post_ra>
